<compile_context>
chip_gen: v7x
topology: tpu7x:2x2x1
jax: 0.10.0
libtpu: 0.0.40
codegen_flags: <defaults>
</compile_context>

<pallas_src>
import functools

import jax
import jax.numpy as jnp
from jax.experimental import pallas as pl
from jax.experimental.pallas import tpu as pltpu

LANE = 128  # TPU lane width
SUBLANE = 8  # f32 sublane height


def _round_up(n, m=LANE):
    return ((n + m - 1) // m) * m


# ---------------------------------------------------------------------------
# Fused AMIO forward kernel:
#   tiled per-modality sequence-sum reduction (f32 VMEM accumulators)
#   -> finalize: 1/L scale, lane concat (+zero pad to k_pad), packed bf16 MXU
#      matmul, ReLU, VPU*w2-row + lane reduce, lane-dense (B_tile, 128) store.
# ---------------------------------------------------------------------------
def _amio_fused_kernel(t_ref, a_ref, v_ref,
                       w1_ref, b1_ref, w2_ref, b2_ref,
                       o_ref,
                       acc_t, acc_a, acc_v,
                       *, inv_lt, inv_la, inv_lv, k_rem):
    s = pl.program_id(1)  # sequence-reduction axis (last grid axis)

    @pl.when(s == 0)
    def _init():
        acc_t[...] = jnp.zeros_like(acc_t)
        acc_a[...] = jnp.zeros_like(acc_a)
        acc_v[...] = jnp.zeros_like(acc_v)

    # f32 accumulation of the raw per-modality sequence sums (one chunk/step).
    acc_t[...] += jnp.sum(t_ref[...].astype(jnp.float32), axis=1)
    acc_a[...] += jnp.sum(a_ref[...].astype(jnp.float32), axis=1)
    acc_v[...] += jnp.sum(v_ref[...].astype(jnp.float32), axis=1)

    @pl.when(s == pl.num_programs(1) - 1)
    def _finalize():
        tb = acc_t.shape[0]
        # 1/L applied once at finalize (kept out of the per-step loop).
        parts = [acc_t[...] * inv_lt, acc_a[...] * inv_la, acc_v[...] * inv_lv]
        if k_rem > 0:
            parts.append(jnp.zeros((tb, k_rem), jnp.float32))
        feat = jnp.concatenate(parts, axis=-1)                    # (tb, k_pad)

        # Single packed MXU matmul, bf16 operands, f32 accumulation.
        h = jnp.dot(feat.astype(w1_ref.dtype), w1_ref[...],
                    preferred_element_type=jnp.float32) + b1_ref[...]
        h = jnp.maximum(h, 0.0)                                    # f32 VPU

        # Second Linear has a single output column: VPU mul + lane reduce
        # instead of a 128-padded MXU pass + w2 weight DMA.
        out = jnp.sum(h * w2_ref[...], axis=-1, keepdims=True)     # (tb, 1)
        o_ref[...] = (jnp.broadcast_to(out, o_ref.shape)
                      + b2_ref[...]).astype(o_ref.dtype)           # unmasked vst


def _num_seq_steps(lengths, target_tile):
    """Largest step count <= max(L)/target_tile that gives per-modality tiles
    which divide L and are sublane-aligned (or the full sequence)."""
    ns = max(1, max(lengths) // max(1, target_tile))

    def ok(n):
        for L in lengths:
            if L % n:
                return False
            t = L // n
            if t != L and t % SUBLANE:
                return False
        return True

    while ns > 1 and not ok(ns):
        ns -= 1
    return ns


def _fused_head(packed, text_x, audio_x, video_x, *, seq_tile=512, batch_tile=None):
    B, Lt, Dt = text_x.shape
    _, La, Da = audio_x.shape
    _, Lv, Dv = video_x.shape

    k_pad, h_pad = packed["w1"].shape
    out_lanes = packed["b2"].shape[1]
    k_rem = k_pad - (Dt + Da + Dv)
    assert k_rem >= 0

    if batch_tile is None:
        batch_tile = min(B, 128)
    while B % batch_tile:
        batch_tile -= 1
    nb = B // batch_tile

    ns = _num_seq_steps((Lt, La, Lv), seq_tile)
    tt, ta, tv = Lt // ns, La // ns, Lv // ns

    kernel = functools.partial(
        _amio_fused_kernel,
        inv_lt=1.0 / Lt, inv_la=1.0 / La, inv_lv=1.0 / Lv, k_rem=k_rem)

    out = pl.pallas_call(
        kernel,
        out_shape=jax.ShapeDtypeStruct((B, out_lanes), jnp.float32),
        grid_spec=pltpu.PrefetchScalarGridSpec(
            num_scalar_prefetch=0,
            grid=(nb, ns),  # (parallel batch tiles, sequence reduction)
            in_specs=[
                # Activations at natural feature widths (full last dim).
                pl.BlockSpec((batch_tile, tt, Dt), lambda b, s: (b, s, 0)),
                pl.BlockSpec((batch_tile, ta, Da), lambda b, s: (b, s, 0)),
                pl.BlockSpec((batch_tile, tv, Dv), lambda b, s: (b, s, 0)),
                # Weights/biases: constant index_map -> resident, DMA'd once.
                pl.BlockSpec((k_pad, h_pad), lambda b, s: (0, 0)),
                pl.BlockSpec((1, h_pad), lambda b, s: (0, 0)),
                pl.BlockSpec((1, h_pad), lambda b, s: (0, 0)),
                pl.BlockSpec((1, out_lanes), lambda b, s: (0, 0)),
            ],
            out_specs=pl.BlockSpec((batch_tile, out_lanes), lambda b, s: (b, 0)),
            scratch_shapes=[
                pltpu.VMEM((batch_tile, Dt), jnp.float32),
                pltpu.VMEM((batch_tile, Da), jnp.float32),
                pltpu.VMEM((batch_tile, Dv), jnp.float32),
            ],
        ),
        compiler_params=pltpu.CompilerParams(
            dimension_semantics=("parallel", "arbitrary"),
            vmem_limit_bytes=32 * 1024 * 1024,
        ),
    )(text_x, audio_x, video_x,
      packed["w1"], packed["b1"], packed["w2"], packed["b2"])

    return out[:, :packed["out_dim"]]                              # (B, 1)


# ---------------------------------------------------------------------------
# AlignSubNet 'avg_pool' kernel (explicit path, for heads that are not a pure
# sequence mean). Wrapper reshapes (B, src, D) -> (B, pool, dst, D) (a free
# view) so the output rows can be tiled with a plain BlockSpec grid.
# ---------------------------------------------------------------------------
def _align_avgpool_kernel(x_ref, o_ref):
    pool = x_ref.shape[1]
    o_ref[...] = (jnp.sum(x_ref[...].astype(jnp.float32), axis=1)
                  * (1.0 / pool)).astype(o_ref.dtype)


def align_avg_pool(x, dst_len):
    """Pool (B, src_len, D) -> (B, dst_len, D). Identity if already aligned."""
    B, src_len, D = x.shape
    if src_len == dst_len:
        return x
    # TODO(synk): PyTorch AlignSubNet 'avg_pool' also handles non-divisible
    # lengths; only the integer pooling factor case is covered here.
    assert src_len % dst_len == 0, "integer pooling factor assumed"
    pool = src_len // dst_len
    x4 = x.reshape(B, pool, dst_len, D)

    dst_tile = min(dst_len, 128) if dst_len % SUBLANE == 0 else dst_len
    while dst_len % dst_tile:
        dst_tile -= 1

    return pl.pallas_call(
        _align_avgpool_kernel,
        out_shape=jax.ShapeDtypeStruct((B, dst_len, D), x.dtype),
        grid=(dst_len // dst_tile,),
        in_specs=[pl.BlockSpec((B, pool, dst_tile, D), lambda j: (0, 0, j, 0))],
        out_specs=pl.BlockSpec((B, dst_tile, D), lambda j: (0, j, 0)),
        compiler_params=pltpu.CompilerParams(
            dimension_semantics=("parallel",),
            vmem_limit_bytes=32 * 1024 * 1024,
        ),
    )(x4)


# ---------------------------------------------------------------------------
# Parameters
# ---------------------------------------------------------------------------
def init_params(key, Dt, Da, Dv, H):
    kt, ka, kv, k2 = jax.random.split(key, 4)
    s1 = 1.0 / jnp.sqrt(jnp.float32(Dt + Da + Dv))
    s2 = 1.0 / jnp.sqrt(jnp.float32(H))
    return {
        "wt": jax.random.normal(kt, (Dt, H), jnp.float32) * s1,
        "wa": jax.random.normal(ka, (Da, H), jnp.float32) * s1,
        "wv": jax.random.normal(kv, (Dv, H), jnp.float32) * s1,
        "b1": jnp.zeros((1, H), jnp.float32),
        "w2": jax.random.normal(k2, (H, 1), jnp.float32) * s2,
        "b2": jnp.zeros((1, 1), jnp.float32),
    }


def pack_params(params, *, mxu_dtype=jnp.bfloat16):
    """Pack wt/wa/wv into one (k_pad, h_pad) bf16 weight (K padded ONCE);
    keep VPU-side params (b1, w2 row, b2) in f32."""
    Dt, H = params["wt"].shape
    Da = params["wa"].shape[0]
    Dv = params["wv"].shape[0]
    out_dim = params["w2"].shape[1]
    assert out_dim == 1

    K = Dt + Da + Dv
    k_pad = _round_up(K)
    h_pad = _round_up(H)

    w1 = jnp.zeros((k_pad, h_pad), jnp.float32)
    w1 = w1.at[0:Dt, :H].set(params["wt"])
    w1 = w1.at[Dt:Dt + Da, :H].set(params["wa"])
    w1 = w1.at[Dt + Da:K, :H].set(params["wv"])
    b1 = jnp.zeros((1, h_pad), jnp.float32).at[:, :H].set(params["b1"])
    w2 = jnp.zeros((1, h_pad), jnp.float32).at[:, :H].set(params["w2"][:, 0][None, :])
    b2 = jnp.tile(params["b2"].astype(jnp.float32), (1, LANE))     # (1, 128)
    return {"w1": w1.astype(mxu_dtype), "b1": b1, "w2": w2, "b2": b2,
            "out_dim": out_dim}


# ---------------------------------------------------------------------------
# AMIO forward (semantics of models/AMIO.py)
# ---------------------------------------------------------------------------
def amio_forward(packed, text_x, audio_x, video_x, *, need_model_aligned=True,
                 fuse_align=True, seq_tile=512, batch_tile=None):
    """AMIO.forward: (optional) AlignSubNet('avg_pool') then the V1-style head.

    For this head the strided avg-pool followed by the head's own sequence
    mean equals the mean over the full source sequence (when src % dst == 0),
    so with fuse_align=True the align step is folded into the tiled sequence
    reduction and the forward is a single pallas_call. The explicit align
    path stays selectable for heads that are not a pure sequence mean.
    """
    if need_model_aligned:
        dst = text_x.shape[1]  # AlignSubNet.get_seq_len() == text seq len
        divisible = (audio_x.shape[1] % dst == 0) and (video_x.shape[1] % dst == 0)
        if not (fuse_align and divisible):
            audio_x = align_avg_pool(audio_x, dst)
            video_x = align_avg_pool(video_x, dst)
    return _fused_head(packed, text_x, audio_x, video_x,
                       seq_tile=seq_tile, batch_tile=batch_tile)


# Pure-JAX (f32) reference for correctness checking.
def _reference(params, text_x, audio_x, video_x):
    tm = jnp.mean(text_x, axis=1)
    am = jnp.mean(audio_x, axis=1)
    vm = jnp.mean(video_x, axis=1)
    feat = jnp.concatenate([tm, am, vm], axis=-1)
    w1 = jnp.concatenate([params["wt"], params["wa"], params["wv"]], axis=0)
    h = jnp.maximum(feat @ w1 + params["b1"], 0.0)
    return h @ params["w2"] + params["b2"]


if __name__ == "__main__":
    key = jax.random.PRNGKey(0)
    kt, ka, kv, kp = jax.random.split(key, 4)

    B = 16
    Lt, Dt = 16, 32        # text:  (B, seq_text, d_text)
    La, Da = 32, 16        # audio: pooled 32 -> 16 when aligned
    Lv, Dv = 32, 20        # video: pooled 32 -> 16 when aligned
    H = 32

    text_x = jax.random.normal(kt, (B, Lt, Dt), jnp.float32)
    audio_x = jax.random.normal(ka, (B, La, Da), jnp.float32)
    video_x = jax.random.normal(kv, (B, Lv, Dv), jnp.float32)

    params = init_params(kp, Dt, Da, Dv, H)
    packed = pack_params(params)

    # Fused forward: one pallas_call, grid = (2 parallel batch tiles,
    # 2 sequence-reduction steps), align folded into the reduction.
    out = amio_forward(packed, text_x, audio_x, video_x,
                       need_model_aligned=True, fuse_align=True,
                       seq_tile=16, batch_tile=8)
    jax.block_until_ready(out)
    assert out.shape == (B, 1)

    # (a) vs pure-JAX f32 reference (loose tol: w1 is bf16 on the MXU).
    ref = _reference(params, text_x, audio_x, video_x)
    assert jnp.allclose(out, ref, rtol=2e-2, atol=2e-2)

    # (b) vs the explicit AlignSubNet('avg_pool') kernel path + head.
    out_al = amio_forward(packed, text_x, audio_x, video_x,
                          need_model_aligned=True, fuse_align=False,
                          seq_tile=16, batch_tile=8)
    jax.block_until_ready(out_al)
    assert jnp.allclose(out, out_al, rtol=1e-4, atol=1e-5)

    print("KERNEL_OK")
</pallas_src>

<mosaic_0001>
module attributes {stable_mosaic.version = 11 : i64} {
  func.func @_amio_fused_kernel(%arg0: i32, %arg1: i32, %arg2: memref<8x8x32xf32, #tpu.memory_space<vmem>>, %arg3: memref<8x16x16xf32, #tpu.memory_space<vmem>>, %arg4: memref<8x16x20xf32, #tpu.memory_space<vmem>>, %arg5: memref<128x128xbf16, #tpu.memory_space<vmem>>, %arg6: memref<1x128xf32, #tpu.memory_space<vmem>>, %arg7: memref<1x128xf32, #tpu.memory_space<vmem>>, %arg8: memref<1x128xf32, #tpu.memory_space<vmem>>, %arg9: memref<8x128xf32, #tpu.memory_space<vmem>>, %arg10: memref<8x32xf32, #tpu.memory_space<vmem>>, %arg11: memref<8x16xf32, #tpu.memory_space<vmem>>, %arg12: memref<8x20xf32, #tpu.memory_space<vmem>>) attributes {dimension_semantics = [#tpu.dimension_semantics<parallel>, #tpu.dimension_semantics<arbitrary>], iteration_bounds = array<i64: 2, 2>, scalar_prefetch = 0 : i64, scratch_operands = 3 : i64, tpu.core_type = #tpu.core_type<tc>, window_params = [{transform_indices = @transform_0, window_bounds = array<i64: 8, 8, 32>}, {transform_indices = @transform_1, window_bounds = array<i64: 8, 16, 16>}, {transform_indices = @transform_2, window_bounds = array<i64: 8, 16, 20>}, {pipeline_mode = #tpu.pipeline_mode<synchronous>, transform_indices = @transform_3, window_bounds = array<i64: 128, 128>}, {pipeline_mode = #tpu.pipeline_mode<synchronous>, transform_indices = @transform_4, window_bounds = array<i64: 1, 128>}, {pipeline_mode = #tpu.pipeline_mode<synchronous>, transform_indices = @transform_5, window_bounds = array<i64: 1, 128>}, {pipeline_mode = #tpu.pipeline_mode<synchronous>, transform_indices = @transform_6, window_bounds = array<i64: 1, 128>}, {transform_indices = @transform_7, window_bounds = array<i64: 8, 128>}]} {
    %c0_i32 = arith.constant 0 : i32
    %0 = arith.cmpi eq, %arg1, %c0_i32 : i32
    %1 = arith.extui %0 : i1 to i32
    %c0_i32_0 = arith.constant 0 : i32
    %2 = arith.cmpi ne, %1, %c0_i32_0 : i32
    scf.if %2 {
      %cst_24 = arith.constant 0.000000e+00 : f32
      %21 = vector.broadcast %cst_24 : f32 to vector<8x32xf32>
      %c0_25 = arith.constant 0 : index
      %c0_26 = arith.constant 0 : index
      %22 = vector.load %arg10[%c0_25, %c0_26] : memref<8x32xf32, #tpu.memory_space<vmem>>, vector<8x32xf32>
      tpu.vector_store %arg10[%c0_25, %c0_26], %21 {strides = array<i32>} : memref<8x32xf32, #tpu.memory_space<vmem>>, vector<8x32xf32>,
      %cst_27 = arith.constant 0.000000e+00 : f32
      %23 = vector.broadcast %cst_27 : f32 to vector<8x16xf32>
      %c0_28 = arith.constant 0 : index
      %c0_29 = arith.constant 0 : index
      %24 = vector.load %arg11[%c0_28, %c0_29] : memref<8x16xf32, #tpu.memory_space<vmem>>, vector<8x16xf32>
      tpu.vector_store %arg11[%c0_28, %c0_29], %23 {strides = array<i32>} : memref<8x16xf32, #tpu.memory_space<vmem>>, vector<8x16xf32>,
      %cst_30 = arith.constant 0.000000e+00 : f32
      %25 = vector.broadcast %cst_30 : f32 to vector<8x20xf32>
      %c0_31 = arith.constant 0 : index
      %c0_32 = arith.constant 0 : index
      %26 = vector.load %arg12[%c0_31, %c0_32] : memref<8x20xf32, #tpu.memory_space<vmem>>, vector<8x20xf32>
      tpu.vector_store %arg12[%c0_31, %c0_32], %25 {strides = array<i32>} : memref<8x20xf32, #tpu.memory_space<vmem>>, vector<8x20xf32>,
    } else {
    }
    %c0 = arith.constant 0 : index
    %c0_1 = arith.constant 0 : index
    %3 = vector.load %arg10[%c0, %c0_1] : memref<8x32xf32, #tpu.memory_space<vmem>>, vector<8x32xf32>
    %c0_2 = arith.constant 0 : index
    %c0_3 = arith.constant 0 : index
    %c0_4 = arith.constant 0 : index
    %4 = vector.load %arg2[%c0_2, %c0_3, %c0_4] : memref<8x8x32xf32, #tpu.memory_space<vmem>>, vector<8x8x32xf32>
    %cst = arith.constant dense<0.000000e+00> : vector<8x32xf32>
    %5 = vector.multi_reduction <add>, %4, %cst [1] : vector<8x8x32xf32> to vector<8x32xf32>
    %6 = arith.addf %3, %5 : vector<8x32xf32>
    %c0_5 = arith.constant 0 : index
    %c0_6 = arith.constant 0 : index
    %7 = vector.load %arg10[%c0_5, %c0_6] : memref<8x32xf32, #tpu.memory_space<vmem>>, vector<8x32xf32>
    tpu.vector_store %arg10[%c0_5, %c0_6], %6 {strides = array<i32>} : memref<8x32xf32, #tpu.memory_space<vmem>>, vector<8x32xf32>,
    %c0_7 = arith.constant 0 : index
    %c0_8 = arith.constant 0 : index
    %8 = vector.load %arg11[%c0_7, %c0_8] : memref<8x16xf32, #tpu.memory_space<vmem>>, vector<8x16xf32>
    %c0_9 = arith.constant 0 : index
    %c0_10 = arith.constant 0 : index
    %c0_11 = arith.constant 0 : index
    %9 = vector.load %arg3[%c0_9, %c0_10, %c0_11] : memref<8x16x16xf32, #tpu.memory_space<vmem>>, vector<8x16x16xf32>
    %cst_12 = arith.constant dense<0.000000e+00> : vector<8x16xf32>
    %10 = vector.multi_reduction <add>, %9, %cst_12 [1] : vector<8x16x16xf32> to vector<8x16xf32>
    %11 = arith.addf %8, %10 : vector<8x16xf32>
    %c0_13 = arith.constant 0 : index
    %c0_14 = arith.constant 0 : index
    %12 = vector.load %arg11[%c0_13, %c0_14] : memref<8x16xf32, #tpu.memory_space<vmem>>, vector<8x16xf32>
    tpu.vector_store %arg11[%c0_13, %c0_14], %11 {strides = array<i32>} : memref<8x16xf32, #tpu.memory_space<vmem>>, vector<8x16xf32>,
    %c0_15 = arith.constant 0 : index
    %c0_16 = arith.constant 0 : index
    %13 = vector.load %arg12[%c0_15, %c0_16] : memref<8x20xf32, #tpu.memory_space<vmem>>, vector<8x20xf32>
    %c0_17 = arith.constant 0 : index
    %c0_18 = arith.constant 0 : index
    %c0_19 = arith.constant 0 : index
    %14 = vector.load %arg4[%c0_17, %c0_18, %c0_19] : memref<8x16x20xf32, #tpu.memory_space<vmem>>, vector<8x16x20xf32>
    %cst_20 = arith.constant dense<0.000000e+00> : vector<8x20xf32>
    %15 = vector.multi_reduction <add>, %14, %cst_20 [1] : vector<8x16x20xf32> to vector<8x20xf32>
    %16 = arith.addf %13, %15 : vector<8x20xf32>
    %c0_21 = arith.constant 0 : index
    %c0_22 = arith.constant 0 : index
    %17 = vector.load %arg12[%c0_21, %c0_22] : memref<8x20xf32, #tpu.memory_space<vmem>>, vector<8x20xf32>
    tpu.vector_store %arg12[%c0_21, %c0_22], %16 {strides = array<i32>} : memref<8x20xf32, #tpu.memory_space<vmem>>, vector<8x20xf32>,
    %c1_i32 = arith.constant 1 : i32
    %18 = arith.cmpi eq, %arg1, %c1_i32 : i32
    %19 = arith.extui %18 : i1 to i32
    %c0_i32_23 = arith.constant 0 : i32
    %20 = arith.cmpi ne, %19, %c0_i32_23 : i32
    scf.if %20 {
      %c0_24 = arith.constant 0 : index
      %c0_25 = arith.constant 0 : index
      %21 = vector.load %arg10[%c0_24, %c0_25] : memref<8x32xf32, #tpu.memory_space<vmem>>, vector<8x32xf32>
      %cst_26 = arith.constant 6.250000e-02 : f32
      %22 = vector.broadcast %cst_26 : f32 to vector<8x32xf32>
      %23 = arith.mulf %21, %22 : vector<8x32xf32>
      %c0_27 = arith.constant 0 : index
      %c0_28 = arith.constant 0 : index
      %24 = vector.load %arg11[%c0_27, %c0_28] : memref<8x16xf32, #tpu.memory_space<vmem>>, vector<8x16xf32>
      %cst_29 = arith.constant 3.125000e-02 : f32
      %25 = vector.broadcast %cst_29 : f32 to vector<8x16xf32>
      %26 = arith.mulf %24, %25 : vector<8x16xf32>
      %c0_30 = arith.constant 0 : index
      %c0_31 = arith.constant 0 : index
      %27 = vector.load %arg12[%c0_30, %c0_31] : memref<8x20xf32, #tpu.memory_space<vmem>>, vector<8x20xf32>
      %cst_32 = arith.constant 3.125000e-02 : f32
      %28 = vector.broadcast %cst_32 : f32 to vector<8x20xf32>
      %29 = arith.mulf %27, %28 : vector<8x20xf32>
      %cst_33 = arith.constant 0.000000e+00 : f32
      %30 = vector.broadcast %cst_33 : f32 to vector<8x60xf32>
      %31 = tpu.concatenate %23, %26, %29, %30 in 1 : vector<8x32xf32>, vector<8x16xf32>, vector<8x20xf32>, vector<8x60xf32> -> vector<8x128xf32>
      %32 = arith.truncf %31 : vector<8x128xf32> to vector<8x128xbf16>
      %c0_34 = arith.constant 0 : index
      %c0_35 = arith.constant 0 : index
      %33 = vector.load %arg5[%c0_34, %c0_35] : memref<128x128xbf16, #tpu.memory_space<vmem>>, vector<128x128xbf16>
      %cst_36 = arith.constant dense<0.000000e+00> : vector<8x128xf32>
      %34 = tpu.matmul %32, %33, %cst_36 {dimension_numbers = #tpu.dot_dimension_numbers<[1], [0], [0], [1], [0, 0, 1, 1], [], []>} : vector<8x128xbf16>, vector<128x128xbf16>, vector<8x128xf32> -> vector<8x128xf32>
      %c0_37 = arith.constant 0 : index
      %c0_38 = arith.constant 0 : index
      %35 = vector.load %arg6[%c0_37, %c0_38] : memref<1x128xf32, #tpu.memory_space<vmem>>, vector<1x128xf32>
      %36 = vector.broadcast %35 : vector<1x128xf32> to vector<8x128xf32>
      %37 = arith.addf %34, %36 : vector<8x128xf32>
      %cst_39 = arith.constant 0.000000e+00 : f32
      %38 = vector.broadcast %cst_39 : f32 to vector<8x128xf32>
      %39 = arith.maximumf %37, %38 : vector<8x128xf32>
      %c0_40 = arith.constant 0 : index
      %c0_41 = arith.constant 0 : index
      %40 = vector.load %arg7[%c0_40, %c0_41] : memref<1x128xf32, #tpu.memory_space<vmem>>, vector<1x128xf32>
      %41 = vector.broadcast %40 : vector<1x128xf32> to vector<8x128xf32>
      %42 = arith.mulf %39, %41 : vector<8x128xf32>
      %cst_42 = arith.constant dense<0.000000e+00> : vector<8xf32>
      %43 = vector.multi_reduction <add>, %42, %cst_42 [1] : vector<8x128xf32> to vector<8xf32>
      %44 = vector.shape_cast %43 : vector<8xf32> to vector<8x1xf32>
      %45 = vector.shape_cast %44 : vector<8x1xf32> to vector<8x1xf32>
      %46 = vector.broadcast %45 : vector<8x1xf32> to vector<8x128xf32>
      %c0_43 = arith.constant 0 : index
      %c0_44 = arith.constant 0 : index
      %47 = vector.load %arg8[%c0_43, %c0_44] : memref<1x128xf32, #tpu.memory_space<vmem>>, vector<1x128xf32>
      %48 = vector.broadcast %47 : vector<1x128xf32> to vector<8x128xf32>
      %49 = arith.addf %46, %48 : vector<8x128xf32>
      %c0_45 = arith.constant 0 : index
      %c0_46 = arith.constant 0 : index
      %50 = vector.load %arg9[%c0_45, %c0_46] : memref<8x128xf32, #tpu.memory_space<vmem>>, vector<8x128xf32>
      tpu.vector_store %arg9[%c0_45, %c0_46], %49 {strides = array<i32>} : memref<8x128xf32, #tpu.memory_space<vmem>>, vector<8x128xf32>,
    } else {
    }
    return
  }
  func.func @transform_0(%arg0: i32, %arg1: i32) -> (i32, i32, i32) {
    %c0_i32 = arith.constant 0 : i32
    %c0_i32_0 = arith.constant 0 : i32
    return %arg0, %arg1, %c0_i32 : i32, i32, i32
  }
  func.func @transform_1(%arg0: i32, %arg1: i32) -> (i32, i32, i32) {
    %c0_i32 = arith.constant 0 : i32
    %c0_i32_0 = arith.constant 0 : i32
    return %arg0, %arg1, %c0_i32 : i32, i32, i32
  }
  func.func @transform_2(%arg0: i32, %arg1: i32) -> (i32, i32, i32) {
    %c0_i32 = arith.constant 0 : i32
    %c0_i32_0 = arith.constant 0 : i32
    return %arg0, %arg1, %c0_i32 : i32, i32, i32
  }
  func.func @transform_3(%arg0: i32, %arg1: i32) -> (i32, i32) {
    %c0_i32 = arith.constant 0 : i32
    %c0_i32_0 = arith.constant 0 : i32
    %c0_i32_1 = arith.constant 0 : i32
    return %c0_i32, %c0_i32_0 : i32, i32
  }
  func.func @transform_4(%arg0: i32, %arg1: i32) -> (i32, i32) {
    %c0_i32 = arith.constant 0 : i32
    %c0_i32_0 = arith.constant 0 : i32
    %c0_i32_1 = arith.constant 0 : i32
    return %c0_i32, %c0_i32_0 : i32, i32
  }
  func.func @transform_5(%arg0: i32, %arg1: i32) -> (i32, i32) {
    %c0_i32 = arith.constant 0 : i32
    %c0_i32_0 = arith.constant 0 : i32
    %c0_i32_1 = arith.constant 0 : i32
    return %c0_i32, %c0_i32_0 : i32, i32
  }
  func.func @transform_6(%arg0: i32, %arg1: i32) -> (i32, i32) {
    %c0_i32 = arith.constant 0 : i32
    %c0_i32_0 = arith.constant 0 : i32
    %c0_i32_1 = arith.constant 0 : i32
    return %c0_i32, %c0_i32_0 : i32, i32
  }
  func.func @transform_7(%arg0: i32, %arg1: i32) -> (i32, i32) {
    %c0_i32 = arith.constant 0 : i32
    %c0_i32_0 = arith.constant 0 : i32
    return %arg0, %c0_i32 : i32, i32
  }
}

</mosaic_0001>

<bundles_post_ra>
// kernel: tpu_custom_call.1
= control target key start
LH: loop header
LB: loop body
LE: loop exit
PB: predicated region body
PF: predicated region fallthrough
CT: control target
= control target key end

     0   :  { %s1900_s0 = inlined_call_operand.vmem [shape: f32[16,16,32], index: 0, kind: input, shape index: {}]   ;;  %s1901_s1 = inlined_call_operand.vmem [shape: f32[16,32,16], index: 1, kind: input, shape index: {}]   ;;  %s1902_s2 = inlined_call_operand.vmem [shape: f32[16,32,20], index: 2, kind: input, shape index: {}]   ;;  %s1903_s3 = inlined_call_operand.vmem [shape: bf16[128,128], index: 3, kind: input, shape index: {}]   ;;  %s1904_s4 = inlined_call_operand.vmem [shape: f32[1,128], index: 4, kind: input, shape index: {}]   ;;  %s1905_s5 = inlined_call_operand.vmem [shape: f32[1,128], index: 5, kind: input, shape index: {}]   ;;  %s1906_s6 = inlined_call_operand.vmem [shape: f32[1,128], index: 6, kind: input, shape index: {}]   ;;  %s1907_s7 = inlined_call_operand.hbm [shape: f32[16,128], index: 7, kind: output, shape index: {}]  }
   0x1   :  { %1911 = sst [smem:[#allocation15_spill]] %s1900_s0 }
   0x2   :  { %12 = vsyncpa [#allocation9], 0 }
   0x3   :  { %14 = vsyncpa [#allocation9 + $0x1], 0  ;;  %s1541_s24 = smov 0   ;;  %s1543_s25 = smov 0  }
   0x4   :  { %s1545_s26 = smov 0   ;;  %s1547_s27 = smov 0  }
   0x5   :  { %s1549_s28 = smov 0   ;;  %s1551_s29 = smov 0  }
   0x6   :  { %s1553_s30 = smov 0   ;;  %s1555_s8 = smov 0  }
   0x7   :  { %s1557_s9 = smov 0   ;;  %s1559_s10 = smov 0  }
   0x8 LB: > { %s1208_s11 = sadd.s32 4294967295, %s1493_s10   ;;  %s1209_s12 = sadd.s32 4294967294, %s1493_s10   ;;  %s1493_s10 = sphi %s1559_s10, %s20_s10   ;;  %s1489_s9 = sphi %s1557_s9, %s1932_s9   ;;  %s1485_s8 = sphi %s1555_s8, %s1931_s8   ;;  %s1481_s30 = sphi %s1553_s30, %s1930_s30   ;;  %s1477_s29 = sphi %s1551_s29, %s1929_s29   ;;  %s1473_s28 = sphi %s1549_s28, %s1928_s28   ;;  %s1469_s27 = sphi %s1547_s27, %s1927_s27   ;;  %s1465_s26 = sphi %s1545_s26, %s1926_s26   ;;  %s1461_s25 = sphi %s1543_s25, %s1925_s25   ;;  %s1457_s24 = sphi %s1541_s24, %s1924_s24  }
   0x9   : > { %s29_s13 = sadd.s32 1, %s1485_s8  ;;  %s32_s14 = sadd.s32 1, %s1489_s9 }
   0xa   : > { %p30_p0 = scmp.ge.s32.totalorder %s29_s13, 2  ;;  %s41_s15 = sadd.s32 1, %s1473_s28 }
   0xb   : > { %p48_p1 = scmp.ne.s32.totalorder %s1473_s28, %s1469_s27  ;;  %p49_p2 = scmp.eq.s32.totalorder %s1493_s10, 0 }
   0xc   : > { %s1934_s13 = smov (%p30_p0, %s29_s13), 0  ;;  %s1936_s14 = smov (!%p30_p0, %s32_s14), %s1489_s9 }
   0xd   : > { %1912 = sst [smem:[#allocation11_spill]] %s1934_s13  ;;  %s37_s16 = ssub.s32 %s1485_s8, %s1934_s13 }
   0xe   : > { %p1604_p3 = por %p49_p2, %p48_p1  ;;  %p34_p4 = scmp.ge.s32.totalorder %s1936_s14, 2 }
   0xf   : > { %s207_s18 = sadd.s32 1, %s1465_s26  ;;  %p217_p5 = scmp.ne.s32.totalorder %s1465_s26, %s1461_s25 }
  0x10   : > { %p218_p6 = scmp.eq.s32.totalorder %s1208_s11, 3  ;;  %s1938_s14 = smov (%p34_p4, %s1936_s14), 0 }
  0x11   : > { %1914 = sst [smem:[#allocation12_spill]] %s1938_s14  ;;  %p223_p8 = scmp.ne.s32.totalorder %s1461_s25, %s1457_s24 }
  0x12   : > { %p1613_p7 = por %p218_p6, %p217_p5  ;;  %s36_s20 = ssub.s32 %s1489_s9, %s1938_s14 }
  0x13   : > { %p224_p9 = scmp.eq.s32.totalorder %s1209_s12, 3  ;;  %s38_s21 = sor.u32 %s37_s16, %s36_s20 }
  0x14   : > { %p205_p10 = scmp.eq.s32.totalorder %s36_s20, 0  ;;  %p39_p11 = scmp.eq.s32.totalorder %s38_s21, 0 }
  0x15   : > { %p1621_p12 = por %p224_p9, %p223_p8  ;;  %p1211_p13 = scmp.ge.s32.totalorder %s1493_s10, 4 }
  0x16   : > { %s1626_s23 = scalar_select %p205_p10, %s1465_s26, %s207_s18  }
  0x17   : > { %s1916_s22 = scalar_select %p1621_p12, 1, 0 }
  0x18   : > { %s1629_s11 = scalar_select %p39_p11, %s1473_s28, %s41_s15  }
  0x19   : > { %1917 = sst [smem:[#allocation13_spill]] %s1916_s22  ;;  %252 = sbr.rel (%p1211_p13) target bundleno = 76 (0x4c), region = 32 }
  0x1a   : > { %1918 = sst [smem:[#allocation14_spill]] %s1629_s11 }
  0x20   : > { %255 = sbr.rel (!%p1604_p3) target bundleno = 46 (0x2e), region = 36  ;;  %s257_s12 = sand.u32 (%p1604_p3), 1, %s1473_s28  }
  0x21   : > { %s1251_s16 = sshll.u32 (%p1604_p3), %s1489_s9, 4  ;;  %s1212_s20 = sshll.u32 (%p1604_p3), %s257_s12, 6 }
  0x22   : > { %s262_s21 = sadd.s32 (%p1604_p3), %s1485_s8, %s1251_s16  ;;  %s1919_s0 = sld [smem:[#allocation15_spill]] (%p1604_p3) }
  0x23   : > { %s1215_s14 = sshll.u32 (%p1604_p3), %s262_s21, 3  ;;  %s259_s15 = scalar_lea.vmem (%p1604_p3), [#allocation5], %s1212_s20 }
  0x28   : > { %s264_s18 = scalar_lea.vmem %s1919_s0, %s1215_s14 }
  0x29   : > { %v306_v0 = vld [vmem:[%s264_s18] sm:$0xff]  ;;  %v308_v1 = vld [vmem:[%s264_s18 + $0x10] sm:$0xff] }
  0x2a   : > { %v310_v2 = vld [vmem:[%s264_s18 + $0x20] sm:$0xff]  ;;  %307 = vst [vmem:[%s259_s15] sm:$0xff] %v306_v0  ;;  %309 = vst [vmem:[%s259_s15 + $0x8] sm:$0xff] %v308_v1  ;;  %v312_v3 = vld [vmem:[%s264_s18 + $0x30] sm:$0xff] }
  0x2b   : > { %311 = vst [vmem:[%s259_s15 + $0x10] sm:$0xff] %v310_v2  ;;  %v314_v4 = vld [vmem:[%s264_s18 + $0x40] sm:$0xff]  ;;  %v316_v5 = vld [vmem:[%s264_s18 + $0x50] sm:$0xff]  ;;  %313 = vst [vmem:[%s259_s15 + $0x18] sm:$0xff] %v312_v3 }
  0x2c   : > { %315 = vst [vmem:[%s259_s15 + $0x20] sm:$0xff] %v314_v4  ;;  %317 = vst [vmem:[%s259_s15 + $0x28] sm:$0xff] %v316_v5  ;;  %v318_v6 = vld [vmem:[%s264_s18 + $0x60] sm:$0xff]  ;;  %v320_v7 = vld [vmem:[%s264_s18 + $0x70] sm:$0xff] }
  0x2d   : > { %319 = vst [vmem:[%s259_s15 + $0x30] sm:$0xff] %v318_v6  ;;  %321 = vst [vmem:[%s259_s15 + $0x38] sm:$0xff] %v320_v7 }
  0x2e PF: > { %327 = sbr.rel (!%p1604_p3) target bundleno = 61 (0x3d), region = 74  ;;  %s329_s13 = sand.u32 (%p1604_p3), 1, %s1473_s28  }
  0x2f   : > { %s1218_s14 = sshll.u32 (%p1604_p3), %s1485_s8, 1  ;;  %s1216_s22 = sshll.u32 (%p1604_p3), %s329_s13, 7 }
  0x30   : > { %s1252_s12 = sshll.u32 (%p1604_p3), %s1489_s9, 5  ;;  %s331_s18 = scalar_lea.vmem (%p1604_p3), [#allocation6], %s1216_s22 }
  0x31   : > { %s335_s16 = sadd.s32 (%p1604_p3), %s1252_s12, %s1218_s14 }
  0x32   : > { %s1220_s20 = sshll.u32 (%p1604_p3), %s335_s16, 3 }
  0x33   : > { %s1648_s11 = scalar_lea.vmem (%p1604_p3), %s1901_s1, %s1220_s20 }
  0x34   : > { %v395_v8 = vld [vmem:[%s1648_s11] sm:$0xff] (%p1604_p3)  ;;  %v397_v9 = vld [vmem:[%s1648_s11 + $0x8] sm:$0xff] (%p1604_p3) }
  0x35   : > { %v399_v10 = vld [vmem:[%s1648_s11 + $0x20] sm:$0xff]  ;;  %396 = vst [vmem:[%s331_s18] sm:$0xff] %v395_v8  ;;  %398 = vst [vmem:[%s331_s18 + $0x8] sm:$0xff] %v397_v9  ;;  %v401_v11 = vld [vmem:[%s1648_s11 + $0x28] sm:$0xff] }
  0x36   : > { %400 = vst [vmem:[%s331_s18 + $0x10] sm:$0xff] %v399_v10  ;;  %v403_v12 = vld [vmem:[%s1648_s11 + $0x40] sm:$0xff]  ;;  %v405_v13 = vld [vmem:[%s1648_s11 + $0x48] sm:$0xff]  ;;  %402 = vst [vmem:[%s331_s18 + $0x18] sm:$0xff] %v401_v11 }
  0x37   : > { %404 = vst [vmem:[%s331_s18 + $0x20] sm:$0xff] %v403_v12  ;;  %406 = vst [vmem:[%s331_s18 + $0x28] sm:$0xff] %v405_v13  ;;  %v407_v14 = vld [vmem:[%s1648_s11 + $0x60] sm:$0xff]  ;;  %v409_v15 = vld [vmem:[%s1648_s11 + $0x68] sm:$0xff] }
  0x38   : > { %v411_v16 = vld [vmem:[%s1648_s11 + $0x80] sm:$0xff]  ;;  %408 = vst [vmem:[%s331_s18 + $0x30] sm:$0xff] %v407_v14  ;;  %410 = vst [vmem:[%s331_s18 + $0x38] sm:$0xff] %v409_v15  ;;  %v413_v17 = vld [vmem:[%s1648_s11 + $0x88] sm:$0xff] }
  0x39   : > { %412 = vst [vmem:[%s331_s18 + $0x40] sm:$0xff] %v411_v16  ;;  %v415_v18 = vld [vmem:[%s1648_s11 + $0xa0] sm:$0xff]  ;;  %v417_v19 = vld [vmem:[%s1648_s11 + $0xa8] sm:$0xff]  ;;  %414 = vst [vmem:[%s331_s18 + $0x48] sm:$0xff] %v413_v17 }
  0x3a   : > { %416 = vst [vmem:[%s331_s18 + $0x50] sm:$0xff] %v415_v18  ;;  %418 = vst [vmem:[%s331_s18 + $0x58] sm:$0xff] %v417_v19  ;;  %v419_v20 = vld [vmem:[%s1648_s11 + $0xc0] sm:$0xff]  ;;  %v421_v21 = vld [vmem:[%s1648_s11 + $0xc8] sm:$0xff] }
  0x3b   : > { %v423_v22 = vld [vmem:[%s1648_s11 + $0xe0] sm:$0xff]  ;;  %420 = vst [vmem:[%s331_s18 + $0x60] sm:$0xff] %v419_v20  ;;  %422 = vst [vmem:[%s331_s18 + $0x68] sm:$0xff] %v421_v21  ;;  %v425_v23 = vld [vmem:[%s1648_s11 + $0xe8] sm:$0xff] }
  0x3c   : > { %424 = vst [vmem:[%s331_s18 + $0x70] sm:$0xff] %v423_v22  ;;  %426 = vst [vmem:[%s331_s18 + $0x78] sm:$0xff] %v425_v23 }
  0x3d PF: > { %432 = sbr.rel (!%p1604_p3) target bundleno = 76 (0x4c), region = 112  ;;  %s434_s0 = sand.u32 (%p1604_p3), 1, %s1473_s28  }
  0x3e   : > { %s1223_s15 = sshll.u32 (%p1604_p3), %s1485_s8, 1  ;;  %s1221_s13 = sshll.u32 (%p1604_p3), %s434_s0, 7 }
  0x3f   : > { %s1253_s14 = sshll.u32 (%p1604_p3), %s1489_s9, 5  ;;  %s436_s17 = scalar_lea.vmem (%p1604_p3), [#allocation7], %s1221_s13 }
  0x40   : > { %s440_s22 = sadd.s32 (%p1604_p3), %s1253_s14, %s1223_s15 }
  0x41   : > { %s1225_s12 = sshll.u32 (%p1604_p3), %s440_s22, 3 }
  0x42   : > { %s1674_s21 = scalar_lea.vmem (%p1604_p3), %s1902_s2, %s1225_s12 }
  0x43   : > { %v500_v24 = vld [vmem:[%s1674_s21] sm:$0xff] (%p1604_p3)  ;;  %v502_v25 = vld [vmem:[%s1674_s21 + $0x8] sm:$0xff] (%p1604_p3) }
  0x44   : > { %v504_v26 = vld [vmem:[%s1674_s21 + $0x20] sm:$0xff]  ;;  %501 = vst [vmem:[%s436_s17] sm:$0xff] %v500_v24  ;;  %503 = vst [vmem:[%s436_s17 + $0x8] sm:$0xff] %v502_v25  ;;  %v506_v27 = vld [vmem:[%s1674_s21 + $0x28] sm:$0xff] }
  0x45   : > { %505 = vst [vmem:[%s436_s17 + $0x10] sm:$0xff] %v504_v26  ;;  %v508_v28 = vld [vmem:[%s1674_s21 + $0x40] sm:$0xff]  ;;  %v510_v29 = vld [vmem:[%s1674_s21 + $0x48] sm:$0xff]  ;;  %507 = vst [vmem:[%s436_s17 + $0x18] sm:$0xff] %v506_v27 }
  0x46   : > { %509 = vst [vmem:[%s436_s17 + $0x20] sm:$0xff] %v508_v28  ;;  %511 = vst [vmem:[%s436_s17 + $0x28] sm:$0xff] %v510_v29  ;;  %v512_v30 = vld [vmem:[%s1674_s21 + $0x60] sm:$0xff]  ;;  %v514_v31 = vld [vmem:[%s1674_s21 + $0x68] sm:$0xff] }
  0x47   : > { %v516_v32 = vld [vmem:[%s1674_s21 + $0x80] sm:$0xff]  ;;  %513 = vst [vmem:[%s436_s17 + $0x30] sm:$0xff] %v512_v30  ;;  %515 = vst [vmem:[%s436_s17 + $0x38] sm:$0xff] %v514_v31  ;;  %v518_v33 = vld [vmem:[%s1674_s21 + $0x88] sm:$0xff] }
  0x48   : > { %517 = vst [vmem:[%s436_s17 + $0x40] sm:$0xff] %v516_v32  ;;  %v520_v34 = vld [vmem:[%s1674_s21 + $0xa0] sm:$0xff]  ;;  %v522_v35 = vld [vmem:[%s1674_s21 + $0xa8] sm:$0xff]  ;;  %519 = vst [vmem:[%s436_s17 + $0x48] sm:$0xff] %v518_v33 }
  0x49   : > { %521 = vst [vmem:[%s436_s17 + $0x50] sm:$0xff] %v520_v34  ;;  %523 = vst [vmem:[%s436_s17 + $0x58] sm:$0xff] %v522_v35  ;;  %v524_v36 = vld [vmem:[%s1674_s21 + $0xc0] sm:$0xff]  ;;  %v526_v37 = vld [vmem:[%s1674_s21 + $0xc8] sm:$0xff] }
  0x4a   : > { %v528_v38 = vld [vmem:[%s1674_s21 + $0xe0] sm:$0xff]  ;;  %525 = vst [vmem:[%s436_s17 + $0x60] sm:$0xff] %v524_v36  ;;  %527 = vst [vmem:[%s436_s17 + $0x68] sm:$0xff] %v526_v37  ;;  %v530_v39 = vld [vmem:[%s1674_s21 + $0xe8] sm:$0xff] }
  0x4b   : > { %529 = vst [vmem:[%s436_s17 + $0x70] sm:$0xff] %v528_v38  ;;  %531 = vst [vmem:[%s436_s17 + $0x78] sm:$0xff] %v530_v39 }
  0x4c PF: > { %p1226_p0 = scmp.ge.s32.totalorder %s1493_s10, 1  ;;  %p536_p1 = scmp.lt.s32.totalorder %s1493_s10, 5 }
  0x4e   : > { %p537_p2 = pnand %p1226_p0, %p536_p1 }
  0x4f   : > { %s543_s11 = sand.u32 (!%p537_p2), 1, %s1469_s27   ;;  %s593_s18 = sand.u32 (!%p537_p2), 1, %s1461_s25  }
  0x50   : > { %540 = sbr.rel (%p537_p2) target bundleno = 679 (0x2a7), region = 150  ;;  %s1227_s0 = sshll.u32 (!%p537_p2), %s543_s11, 6 }
  0x51   : > { %s1228_s15 = sshll.u32 (!%p537_p2), %s543_s11, 7  ;;  %s1698_s13 = sshll.u32 (!%p537_p2), %s593_s18, 3 }
  0x52   : > { %s545_s14 = scalar_lea.vmem (!%p537_p2), [#allocation5], %s1227_s0  ;;  %s1700_s22 = scalar_lea.vmem (!%p537_p2), [#allocation6], %s1228_s15 }
  0x53   : > { %s1702_s12 = scalar_lea.vmem (!%p537_p2), [#allocation7], %s1228_s15  ;;  %s595_s16 = scalar_lea.vmem (!%p537_p2), [#allocation8], %s1698_s13 }
  0x54   : > { %p1231_p3 = scmp.ne.s32.totalorder (!%p537_p2), %s1477_s29, 0 }
  0x57   : > { %605 = sbr.rel (%p1231_p3) target bundleno = 94 (0x5e), region = 166  ;;  %vm606_vm0 = vcmask (!%p1231_p3), 261120   ;;  %vm608_vm1 = vcmask (!%p1231_p3), 130048   ;;  %vm610_vm2 = vcmask (!%p1231_p3), 162816   ;;  %v1495_v40 = vmov (!%p1231_p3), 0.0  }
  0x58   : > { %607 = vst.msk [vmem:[#allocation2] sm:$0xff] (!%p1231_p3), %vm606_vm0, %v1495_v40 }
  0x59   : > { %609 = vst.msk [vmem:[#allocation3] sm:$0xff] (!%p1231_p3), %vm608_vm1, %v1495_v40 }
  0x5a   : > { %611 = vst.msk [vmem:[#allocation4] sm:$0xff] (!%p1231_p3), %vm610_vm2, %v1495_v40 }
  0x5e PF: > { %v613_v41 = vld [vmem:[%s545_s14] sm:$0xff]  ;;  %v614_v42 = vld [vmem:[%s545_s14 + $0x8] sm:$0xff]  ;;  %vm621_vm3 = vcmask 261120   ;;  %v615_v43 = vld [vmem:[%s545_s14 + $0x10] sm:$0xff]  ;;  %vm686_vm4 = vcmask 1041409   ;;  %vm688_vm5 = vcmask 1042434  }
  0x5f   : > { %v616_v44 = vld [vmem:[%s545_s14 + $0x18] sm:$0xff]  ;;  %v617_v45 = vld [vmem:[%s545_s14 + $0x20] sm:$0xff]  ;;  %v622_v46 = vsel %vm621_vm3, %v613_v41, 0.0  ;;  %v629_v47 = vsel %vm621_vm3, %v614_v42, 0.0  ;;  %v618_v48 = vld [vmem:[%s545_s14 + $0x28] sm:$0xff]  ;;  %v636_v53 = vsel %vm621_vm3, %v615_v43, 0.0 }
  0x60   : > { %v619_v49 = vld [vmem:[%s545_s14 + $0x30] sm:$0xff]  ;;  %v620_v50 = vld [vmem:[%s545_s14 + $0x38] sm:$0xff]  ;;  %v623_v51 = vrot.slane %v622_v46, 4  ;;  %v630_v52 = vrot.slane %v629_v47, 4  ;;  %v637_v54 = vrot.slane %v636_v53, 4  ;;  %v643_v55 = vsel %vm621_vm3, %v616_v44, 0.0 }
  0x61   : > { %v650_v56 = vsel %vm621_vm3, %v617_v45, 0.0  ;;  %v657_v57 = vsel %vm621_vm3, %v618_v48, 0.0  ;;  %v644_v60 = vrot.slane %v643_v55, 4  ;;  %v664_v0 = vsel %vm621_vm3, %v619_v49, 0.0  ;;  %v704_v41 = vld [vmem:[%s1700_s22] sm:$0xff]  ;;  %v705_v42 = vld [vmem:[%s1700_s22 + $0x8] sm:$0xff] }
  0x62   : > { %v624_v58 = vadd.f32 %v623_v51, %v622_v46  ;;  %v631_v59 = vadd.f32 %v630_v52, %v629_v47  ;;  %v651_v61 = vrot.slane %v650_v56, 4  ;;  %v638_v62 = vadd.f32 %v637_v54, %v636_v53  ;;  %v706_v43 = vld [vmem:[%s1700_s22 + $0x10] sm:$0xff]  ;;  %v707_v45 = vld [vmem:[%s1700_s22 + $0x18] sm:$0xff]  ;;  %v708_v46 = vld [vmem:[%s1700_s22 + $0x20] sm:$0xff]  ;;  %p1232_p4 = scmp.ne.s32.totalorder %s1477_s29, 1 }
  0x63   : > { %v658_v63 = vrot.slane %v657_v57, 4  ;;  %v671_v1 = vsel %vm621_vm3, %v620_v50, 0.0  ;;  %vm690_vm6 = vcmask 1043459   ;;  %v645_v4 = vadd.f32 %v644_v60, %v643_v55  ;;  %v709_v50 = vld [vmem:[%s1700_s22 + $0x28] sm:$0xff]  ;;  %v710_v51 = vld [vmem:[%s1700_s22 + $0x30] sm:$0xff]  ;;  %v711_v54 = vld [vmem:[%s1700_s22 + $0x38] sm:$0xff] }
  0x64   : > { %v625_v2 = vrot.slane %v624_v58, 2  ;;  %v632_v3 = vrot.slane %v631_v59, 2  ;;  %v652_v5 = vadd.f32 %v651_v61, %v650_v56  ;;  %v639_v6 = vrot.slane %v638_v62, 2  ;;  %v612_v52 = vld [vmem:[#allocation2] sm:$0xff]  ;;  %s1497_s11 = smov (!%p1232_p4), 32   ;;  %s1499_s15 = smov (!%p1232_p4), 48  }
  0x65   : > { %v659_v7 = vadd.f32 %v658_v63, %v657_v57  ;;  %v665_v8 = vrot.slane %v664_v0, 4  ;;  %v672_v9 = vrot.slane %v671_v1, 4  ;;  %v646_v12 = vrot.slane %v645_v4, 2  ;;  %v713_v60 = vld [vmem:[%s1700_s22 + $0x48] sm:$0xff] }
  0x66   : > { %v626_v10 = vadd.f32 %v625_v2, %v624_v58  ;;  %v633_v11 = vadd.f32 %v632_v3, %v631_v59  ;;  %v653_v13 = vrot.slane %v652_v5, 2  ;;  %v640_v14 = vadd.f32 %v639_v6, %v638_v62  ;;  %v712_v59 = vld [vmem:[%s1700_s22 + $0x40] sm:$0xff]  ;;  %v715_v6 = vld [vmem:[%s1700_s22 + $0x58] sm:$0xff] }
  0x67   : > { %v660_v15 = vrot.slane %v659_v7, 2  ;;  %v666_v16 = vadd.f32 %v665_v8, %v664_v0  ;;  %v673_v17 = vadd.f32 %v672_v9, %v671_v1  ;;  %v647_v20 = vadd.f32 %v646_v12, %v645_v4  ;;  %v714_v1 = vld [vmem:[%s1700_s22 + $0x50] sm:$0xff] }
  0x68   : > { %v627_v18 = vrot.slane %v626_v10, 1  ;;  %v634_v19 = vrot.slane %v633_v11, 1  ;;  %v654_v21 = vadd.f32 %v653_v13, %v652_v5  ;;  %v641_v22 = vrot.slane %v640_v14, 1 }
  0x69   : > { %v661_v23 = vadd.f32 %v660_v15, %v659_v7  ;;  %v667_v24 = vrot.slane %v666_v16, 2  ;;  %v674_v25 = vrot.slane %v673_v17, 2  ;;  %v648_v28 = vrot.slane %v647_v20, 1  ;;  %v716_v7 = vld [vmem:[%s1700_s22 + $0x60] sm:$0xff]  ;;  %v717_v15 = vld [vmem:[%s1700_s22 + $0x68] sm:$0xff] }
  0x6a   : > { %v628_v26 = vadd.f32 %v627_v18, %v626_v10  ;;  %v635_v27 = vadd.f32 %v634_v19, %v633_v11  ;;  %v655_v29 = vrot.slane %v654_v21, 1  ;;  %v642_v30 = vadd.f32 %v641_v22, %v640_v14 }
  0x6b   : > { %v662_v31 = vrot.slane %v661_v23, 1  ;;  %v668_v32 = vadd.f32 %v667_v24, %v666_v16  ;;  %v675_v33 = vadd.f32 %v674_v25, %v673_v17  ;;  %v649_v34 = vadd.f32 %v648_v28, %v647_v20  ;;  %v718_v16 = vld [vmem:[%s1700_s22 + $0x70] sm:$0xff]  ;;  %v719_v25 = vld [vmem:[%s1700_s22 + $0x78] sm:$0xff] }
  0x6c   : > { %v656_v35 = vadd.f32 %v655_v29, %v654_v21  ;;  %v687_v36 = vsel %vm686_vm4, %v635_v27, %v628_v26  ;;  %vm692_vm7 = vcmask 1044484   ;;  %vm694_vm8 = vcmask 1045509  }
  0x6d   : > { %v663_v37 = vadd.f32 %v662_v31, %v661_v23  ;;  %v669_v38 = vrot.slane %v668_v32, 1  ;;  %v676_v39 = vrot.slane %v675_v33, 1  ;;  %v689_v40 = vsel %vm688_vm5, %v642_v30, %v687_v36 }
  0x6e   : > { %v691_v44 = vsel %vm690_vm6, %v649_v34, %v689_v40  ;;  %vm696_vm9 = vcmask 1046534   ;;  %vm698_vm10 = vcmask 1047559   ;;  %vm720_vm11 = vcmask 130048  }
  0x6f   : > { %v670_v47 = vadd.f32 %v669_v38, %v668_v32  ;;  %v677_v48 = vadd.f32 %v676_v39, %v675_v33  ;;  %v693_v49 = vsel %vm692_vm7, %v656_v35, %v691_v44  ;;  %v721_v55 = vsel %vm720_vm11, %v704_v41, 0.0 }
  0x70   : > { %v695_v53 = vsel %vm694_vm8, %v663_v37, %v693_v49  ;;  %v722_v56 = vsel %vm720_vm11, %v705_v42, 0.0  ;;  %v730_v57 = vsel %vm720_vm11, %v706_v43, 0.0  ;;  %v731_v62 = vsel %vm720_vm11, %v707_v45, 0.0 }
  0x71   : > { %v697_v58 = vsel %vm696_vm9, %v670_v47, %v695_v53  ;;  %v723_v61 = vadd.f32 %v722_v56, %v721_v55  ;;  %v739_v63 = vsel %vm720_vm11, %v708_v46, 0.0  ;;  %v732_v2 = vadd.f32 %v731_v62, %v730_v57  ;;  %v813_v62 = vld [vmem:[%s1702_s12 + $0x8] sm:$0xff] }
  0x72   : > { %v699_v0 = vsel %vm698_vm10, %v677_v48, %v697_v58  ;;  %v740_v3 = vsel %vm720_vm11, %v709_v50, 0.0  ;;  %v748_v4 = vsel %vm720_vm11, %v710_v51, 0.0  ;;  %v749_v10 = vsel %vm720_vm11, %v711_v54, 0.0  ;;  %v812_v58 = vld [vmem:[%s1702_s12] sm:$0xff] }
  0x73   : > { %v701_v5 = vadd.f32 %v699_v0, %v612_v52  ;;  %v724_v8 = vrot.slane %v723_v61, 4  ;;  %v741_v9 = vadd.f32 %v740_v3, %v739_v63  ;;  %v733_v11 = vrot.slane %v732_v2, 4  ;;  %v814_v3 = vld [vmem:[%s1702_s12 + $0x10] sm:$0xff] }
  0x74   : > { %v750_v12 = vadd.f32 %v749_v10, %v748_v4  ;;  %v757_v13 = vsel %vm720_vm11, %v712_v59, 0.0  ;;  %v758_v14 = vsel %vm720_vm11, %v713_v60, 0.0  ;;  %v766_v20 = vsel %vm720_vm11, %v714_v1, 0.0 }
  0x75   : > { %702 = vst.msk [vmem:[#allocation2] sm:$0xff] %vm621_vm3, %v701_v5  ;;  %v725_v17 = vadd.f32 %v724_v8, %v723_v61  ;;  %v742_v18 = vrot.slane %v741_v9, 4  ;;  %v759_v19 = vadd.f32 %v758_v14, %v757_v13  ;;  %v734_v21 = vadd.f32 %v733_v11, %v732_v2  ;;  %v816_v8 = vld [vmem:[%s1702_s12 + $0x20] sm:$0xff]  ;;  %v817_v13 = vld [vmem:[%s1702_s12 + $0x28] sm:$0xff] }
  0x76   : > { %v751_v22 = vrot.slane %v750_v12, 4  ;;  %v767_v23 = vsel %vm720_vm11, %v715_v6, 0.0  ;;  %v775_v24 = vsel %vm720_vm11, %v716_v7, 0.0  ;;  %v776_v32 = vsel %vm720_vm11, %v717_v15, 0.0  ;;  %v815_v7 = vld [vmem:[%s1702_s12 + $0x18] sm:$0xff] }
  0x77   : > { %v726_v26 = vrot.slane %v725_v17, 2  ;;  %v743_v27 = vadd.f32 %v742_v18, %v741_v9  ;;  %v760_v28 = vrot.slane %v759_v19, 4  ;;  %v768_v29 = vadd.f32 %v767_v23, %v766_v20  ;;  %v820_v23 = vld [vmem:[%s1702_s12 + $0x40] sm:$0xff] }
  0x78   : > { %v735_v30 = vrot.slane %v734_v21, 2  ;;  %v752_v31 = vadd.f32 %v751_v22, %v750_v12  ;;  %v784_v33 = vsel %vm720_vm11, %v718_v16, 0.0  ;;  %v777_v40 = vadd.f32 %v776_v32, %v775_v24  ;;  %v819_v22 = vld [vmem:[%s1702_s12 + $0x38] sm:$0xff]  ;;  %v821_v32 = vld [vmem:[%s1702_s12 + $0x48] sm:$0xff] }
  0x79   : > { %v727_v34 = vadd.f32 %v726_v26, %v725_v17  ;;  %v744_v35 = vrot.slane %v743_v27, 2  ;;  %v761_v36 = vadd.f32 %v760_v28, %v759_v19  ;;  %v769_v37 = vrot.slane %v768_v29, 4  ;;  %v818_v17 = vld [vmem:[%s1702_s12 + $0x30] sm:$0xff] }
  0x7a   : > { %v736_v38 = vadd.f32 %v735_v30, %v734_v21  ;;  %v753_v39 = vrot.slane %v752_v31, 2  ;;  %v785_v41 = vsel %vm720_vm11, %v719_v25, 0.0  ;;  %v778_v48 = vrot.slane %v777_v40, 4 }
  0x7b   : > { %v728_v42 = vrot.slane %v727_v34, 1  ;;  %v745_v43 = vadd.f32 %v744_v35, %v743_v27  ;;  %v762_v44 = vrot.slane %v761_v36, 2  ;;  %v770_v45 = vadd.f32 %v769_v37, %v768_v29 }
  0x7c   : > { %v737_v46 = vrot.slane %v736_v38, 1  ;;  %v754_v47 = vadd.f32 %v753_v39, %v752_v31  ;;  %v786_v49 = vadd.f32 %v785_v41, %v784_v33  ;;  %v779_v56 = vadd.f32 %v778_v48, %v777_v40  ;;  %v822_v33 = vld [vmem:[%s1702_s12 + $0x50] sm:$0xff] }
  0x7d   : > { %v729_v50 = vadd.f32 %v728_v42, %v727_v34  ;;  %v746_v51 = vrot.slane %v745_v43, 1  ;;  %v763_v52 = vadd.f32 %v762_v44, %v761_v36  ;;  %v771_v53 = vrot.slane %v770_v45, 2  ;;  %v703_v40 = vld [vmem:[#allocation3] sm:$0xff] }
  0x7e   : > { %v738_v54 = vadd.f32 %v737_v46, %v736_v38  ;;  %v755_v55 = vrot.slane %v754_v47, 1  ;;  %v787_v57 = vrot.slane %v786_v49, 4  ;;  %vm828_vm12 = vcmask 162816  }
  0x7f   : > { %v747_v59 = vadd.f32 %v746_v51, %v745_v43  ;;  %v764_v60 = vrot.slane %v763_v52, 1  ;;  %v772_v61 = vadd.f32 %v771_v53, %v770_v45  ;;  %v780_v0 = vrot.slane %v779_v56, 2  ;;  %v823_v43 = vld [vmem:[%s1702_s12 + $0x58] sm:$0xff]  ;;  %v824_v51 = vld [vmem:[%s1702_s12 + $0x60] sm:$0xff] }
  0x80   : > { %v756_v63 = vadd.f32 %v755_v55, %v754_v47  ;;  %v788_v1 = vadd.f32 %v787_v57, %v786_v49  ;;  %v801_v2 = vsel %vm686_vm4, %v738_v54, %v729_v50  ;;  %v829_v9 = vsel %vm828_vm12, %v812_v58, 0.0 }
  0x81   : > { %v765_v4 = vadd.f32 %v764_v60, %v763_v52  ;;  %v773_v5 = vrot.slane %v772_v61, 1  ;;  %v802_v6 = vsel %vm688_vm5, %v747_v59, %v801_v2  ;;  %v781_v10 = vadd.f32 %v780_v0, %v779_v56  ;;  %v825_v52 = vld [vmem:[%s1702_s12 + $0x68] sm:$0xff]  ;;  %v826_v60 = vld [vmem:[%s1702_s12 + $0x70] sm:$0xff] }
  0x82   : > { %v789_v11 = vrot.slane %v788_v1, 2  ;;  %v803_v12 = vsel %vm690_vm6, %v756_v63, %v802_v6  ;;  %v830_v14 = vsel %vm828_vm12, %v813_v62, 0.0  ;;  %v838_v19 = vsel %vm828_vm12, %v814_v3, 0.0 }
  0x83   : > { %v774_v15 = vadd.f32 %v773_v5, %v772_v61  ;;  %v804_v16 = vsel %vm692_vm7, %v765_v4, %v803_v12  ;;  %v831_v18 = vadd.f32 %v830_v14, %v829_v9  ;;  %v782_v20 = vrot.slane %v781_v10, 1  ;;  %v827_v5 = vld [vmem:[%s1702_s12 + $0x78] sm:$0xff] }
  0x84   : > { %v790_v21 = vadd.f32 %v789_v11, %v788_v1  ;;  %v839_v24 = vsel %vm828_vm12, %v815_v7, 0.0  ;;  %v847_v25 = vsel %vm828_vm12, %v816_v8, 0.0  ;;  %v848_v29 = vsel %vm828_vm12, %v817_v13, 0.0 }
  0x85   : > { %v805_v26 = vsel %vm694_vm8, %v774_v15, %v804_v16  ;;  %v832_v27 = vrot.slane %v831_v18, 4  ;;  %v840_v28 = vadd.f32 %v839_v24, %v838_v19  ;;  %v783_v30 = vadd.f32 %v782_v20, %v781_v10 }
  0x86   : > { %v791_v31 = vrot.slane %v790_v21, 1  ;;  %v849_v34 = vadd.f32 %v848_v29, %v847_v25  ;;  %v856_v35 = vsel %vm828_vm12, %v818_v17, 0.0  ;;  %v857_v38 = vsel %vm828_vm12, %v819_v22, 0.0 }
  0x87   : > { %v833_v36 = vadd.f32 %v832_v27, %v831_v18  ;;  %v841_v37 = vrot.slane %v840_v28, 4  ;;  %v865_v39 = vsel %vm828_vm12, %v820_v23, 0.0  ;;  %v806_v42 = vsel %vm696_vm9, %v783_v30, %v805_v26 }
  0x88   : > { %v792_v41 = vadd.f32 %v791_v31, %v790_v21  ;;  %v850_v44 = vrot.slane %v849_v34, 4  ;;  %v858_v45 = vadd.f32 %v857_v38, %v856_v35  ;;  %v866_v48 = vsel %vm828_vm12, %v821_v32, 0.0 }
  0x89   : > { %v834_v46 = vrot.slane %v833_v36, 2  ;;  %v842_v47 = vadd.f32 %v841_v37, %v840_v28  ;;  %v874_v49 = vsel %vm828_vm12, %v822_v33, 0.0  ;;  %v867_v55 = vadd.f32 %v866_v48, %v865_v39  ;;  %v811_v48 = vld [vmem:[#allocation4] sm:$0xff] }
  0x8a   : > { %v807_v50 = vsel %vm698_vm10, %v792_v41, %v806_v42  ;;  %v851_v53 = vadd.f32 %v850_v44, %v849_v34  ;;  %v859_v54 = vrot.slane %v858_v45, 4  ;;  %v875_v59 = vsel %vm828_vm12, %v823_v43, 0.0 }
  0x8b   : > { %v809_v56 = vadd.f32 %v807_v50, %v703_v40  ;;  %v835_v57 = vadd.f32 %v834_v46, %v833_v36  ;;  %v843_v58 = vrot.slane %v842_v47, 2  ;;  %v868_v63 = vrot.slane %v867_v55, 4 }
  0x8c   : > { %v852_v61 = vrot.slane %v851_v53, 2  ;;  %v860_v62 = vadd.f32 %v859_v54, %v858_v45  ;;  %v876_v0 = vadd.f32 %v875_v59, %v874_v49  ;;  %v883_v3 = vsel %vm828_vm12, %v824_v51, 0.0  ;;  %v1375_v54 = vld [vmem:[%s1903_s3] sm:$0xff] (!%p1232_p4)   ;;  %v1377_v59 = vld [vmem:[%s1903_s3 + $0x10] sm:$0xff] (!%p1232_p4)  }
  0x8d   : > { %810 = vst.msk [vmem:[#allocation3] sm:$0xff] %vm720_vm11, %v809_v56  ;;  %v836_v1 = vrot.slane %v835_v57, 1  ;;  %v844_v2 = vadd.f32 %v843_v58, %v842_v47  ;;  %v884_v4 = vsel %vm828_vm12, %v825_v52, 0.0  ;;  %v869_v8 = vadd.f32 %v868_v63, %v867_v55  ;;  %v1381_v63 = vld [vmem:[%s1903_s3 + $0x30] sm:$0xff] (!%p1232_p4)  }
  0x8e   : > { %v853_v6 = vadd.f32 %v852_v61, %v851_v53  ;;  %v861_v7 = vrot.slane %v860_v62, 2  ;;  %v877_v9 = vrot.slane %v876_v0, 4  ;;  %v885_v12 = vadd.f32 %v884_v4, %v883_v3  ;;  %v1379_v61 = vld [vmem:[%s1903_s3 + $0x20] sm:$0xff] (!%p1232_p4)  }
  0x8f   : > { %v837_v10 = vadd.f32 %v836_v1, %v835_v57  ;;  %v845_v11 = vrot.slane %v844_v2, 1  ;;  %v892_v13 = vsel %vm828_vm12, %v826_v60, 0.0  ;;  %v870_v16 = vrot.slane %v869_v8, 2  ;;  %v1376_v57 = vld [vmem:[%s1903_s3 + $0x8] sm:$0xff] (!%p1232_p4)   ;;  %v1378_v60 = vld [vmem:[%s1903_s3 + $0x18] sm:$0xff] (!%p1232_p4)   ;;  %v923_v1 = vld [vmem:[#allocation2] sm:$0xff] (!%p1232_p4) }
  0x90   : > { %v854_v14 = vrot.slane %v853_v6, 1  ;;  %v862_v15 = vadd.f32 %v861_v7, %v860_v62  ;;  %v878_v17 = vadd.f32 %v877_v9, %v876_v0  ;;  %v886_v19 = vrot.slane %v885_v12, 4  ;;  %v1380_v62 = vld [vmem:[%s1903_s3 + $0x28] sm:$0xff] (!%p1232_p4)   ;;  %v1382_v0 = vld [vmem:[%s1903_s3 + $0x38] sm:$0xff] (!%p1232_p4)  }
  0x91   : > { %v846_v18 = vadd.f32 %v845_v11, %v844_v2  ;;  %v893_v20 = vsel %vm828_vm12, %v827_v5, 0.0  ;;  %v871_v23 = vadd.f32 %v870_v16, %v869_v8  ;;  %v1496_v56 = vmov (!%p1232_p4), 0.0   ;;  %v1233_v8 = vld [vmem:[%s1904_s4] ss:$0 sm:$0xff] (!%p1232_p4) }
  0x92   : > { %v855_v21 = vadd.f32 %v854_v14, %v853_v6  ;;  %v863_v22 = vrot.slane %v862_v15, 1  ;;  %v879_v24 = vrot.slane %v878_v17, 2  ;;  %v887_v25 = vadd.f32 %v886_v19, %v885_v12  ;;  %1263 = vmatprep.subr.bf16.mxu0 (!%p1232_p4), %v1496_v56 }
  0x93   : > { %v894_v26 = vadd.f32 %v893_v20, %v892_v13  ;;  %v909_v27 = vsel %vm686_vm4, %v846_v18, %v837_v10  ;;  %v872_v29 = vrot.slane %v871_v23, 1  ;;  %1264 = vmatpush3.bf16.msra.mxu0 (!%p1232_p4), %v1375_v54  ;;  %vm1498_vm13 = vmmov (!%p1232_p4), 0   ;;  %v1245_v13 = vld [vmem:[%s1905_s5] ss:$0 sm:$0xff] (!%p1232_p4) }
  0x94   : > { %v864_v28 = vadd.f32 %v863_v22, %v862_v15  ;;  %v880_v30 = vadd.f32 %v879_v24, %v878_v17  ;;  %v910_v31 = vsel %vm688_vm5, %v855_v21, %v909_v27  ;;  %v888_v32 = vrot.slane %v887_v25, 2  ;;  %v925_v52 = vld [vmem:[#allocation3] sm:$0xff] (!%p1232_p4)  ;;  %1265 = vmatprep.subr.bf16.mxu0 (!%p1232_p4), %v1496_v56  ;;  %1279 = vmatprep.mubr.msk.bf16.mxu0 (!%p1232_p4), %vm1498_vm13, %v1496_v56  ;;  %v1246_v17 = vld [vmem:[%s1906_s6] ss:$0 sm:$0xff] (!%p1232_p4) }
  0x95   : > { %v895_v33 = vrot.slane %v894_v26, 4  ;;  %v873_v34 = vadd.f32 %v872_v29, %v871_v23  ;;  %v926_v55 = vmul.f32 (!%p1232_p4), 0.03125, %v925_v52  ;;  %v924_v3 = vmul.f32 (!%p1232_p4), 0.0625, %v923_v1 }
  0x96   : > { %v881_v35 = vrot.slane %v880_v30, 1  ;;  %v911_v36 = vsel %vm690_vm6, %v864_v28, %v910_v31  ;;  %v889_v37 = vadd.f32 %v888_v32, %v887_v25  ;;  %vm938_vm14 = vcmask (!%p1232_p4), 392192  }
  0x97   : > { %v896_v38 = vadd.f32 %v895_v33, %v894_v26  ;;  %v912_v40 = vsel %vm692_vm7, %v873_v34, %v911_v36  ;;  %930 = vrot.lane.b32.xlu0 (!%p1232_p4), %v926_v55, %s1497_s11  ;;  %1266 = vmatpush3.bf16.msra.mxu0 (!%p1232_p4), %v1376_v57  ;;  %vm940_vm15 = vcmask (!%p1232_p4), 556032  }
  0x98   : > { %v882_v39 = vadd.f32 %v881_v35, %v880_v30  ;;  %v890_v41 = vrot.slane %v889_v37, 1  ;;  %1267 = vmatprep.subr.bf16.mxu0 (!%p1232_p4), %v1496_v56  ;;  %vm1242_vm0 = vmpackc.low (!%p1232_p4), %vm940_vm15, %vm940_vm15 }
  0x99   : > { %v897_v42 = vrot.slane %v896_v38, 2 }
  0x9a   : > { %v891_v43 = vadd.f32 %v890_v41, %v889_v37  ;;  %v913_v45 = vsel %vm694_vm8, %v882_v39, %v912_v40 }
  0x9b   : > { %v898_v44 = vadd.f32 %v897_v42, %v896_v38  ;;  %1268 = vmatpush3.bf16.msra.mxu0 (!%p1232_p4), %v1377_v59 }
  0x9c   : > { %v914_v47 = vsel %vm696_vm9, %v891_v43, %v913_v45  ;;  %1269 = vmatprep.subr.bf16.mxu0 (!%p1232_p4), %v1496_v56 }
  0x9d   : > { %v899_v46 = vrot.slane %v898_v44, 1 }
  0x9e   : > { %922 = sbr.rel (%p1232_p4) target bundleno = 655 (0x28f), region = 170 }
  0x9f   : > { %v900_v49 = vadd.f32 %v899_v46, %v898_v44  ;;  %1270 = vmatpush3.bf16.msra.mxu0 (!%p1232_p4), %v1378_v60 }
  0xa0   : > { %1271 = vmatprep.subr.bf16.mxu0 (!%p1232_p4), %v1496_v56 }
  0xa1   : > { %v915_v50 = vsel %vm698_vm10, %v900_v49, %v914_v47 }
  0xa2   : > { %v917_v51 = vadd.f32 %v915_v50, %v811_v48 }
  0xa3   : > { %1272 = vmatpush3.bf16.msra.mxu0 (!%p1232_p4), %v1379_v61 }
  0xa4   : > { %918 = vst.msk [vmem:[#allocation4] sm:$0xff] %vm828_vm12, %v917_v51  ;;  %1273 = vmatprep.subr.bf16.mxu0 (!%p1232_p4), %v1496_v56 }
  0xa7   : > { %1274 = vmatpush3.bf16.msra.mxu0 %v1380_v62 }
  0xa8   : > { %1275 = vmatprep.subr.bf16.mxu0 %v1496_v56 }
  0xab   : > { %v927_v53 = vld [vmem:[#allocation4] sm:$0xff]  ;;  %1276 = vmatpush3.bf16.msra.mxu0 %v1381_v63 }
  0xac   : > { %v928_v58 = vmul.f32 0.03125, %v927_v53  ;;  %1277 = vmatprep.subr.bf16.mxu0 %v1496_v56 }
  0xae   : > { %934 = vrot.lane.b32.xlu0 %v928_v58, %s1499_s15 }
  0xaf   : > { %1278 = vmatpush3.bf16.msra.mxu0 %v1382_v0 }
 0x109   : > { %v931_v2 = vpop.permute.xlu0 %930 }
 0x10a   : > { %v937_v4 = vsel %vm621_vm3, %v924_v3, %v931_v2 }
 0x120   : > { %v935_v5 = vpop.permute.xlu0 %934 }
 0x121   : > { %v939_v6 = vsel %vm938_vm14, %v937_v4, %v935_v5 }
 0x122   : > { %v1243_v7 = vpack.c.bf16 %v939_v6, %v939_v6 }
 0x124   : > { %1280 = vmatmul.mubr.msk.bf16.vlgmr.msra.gmra.mrb[0].mxu0 %vm1242_vm0, %v1243_v7 }
 0x1f7   : > { %v1048_v9 = vpop.f32.mrb[0].mxu0 }
 0x1f8   : > { %v1049_v10 = vadd.f32 %v1233_v8, %v1048_v9  ;;  %v1281_v11 = vpop.f32.mrb[1].mxu0 }
 0x1f9   : > { %v1051_v12 = vpop.f32.mrb[2].mxu0 }
 0x1fa   : > { %v1054_v14 = vmax.f32 %v1049_v10, 0.0  ;;  %v1282_v15 = vpop.f32.mrb[3].mxu0 }
 0x1fc   : > { %v1062_v16 = vmul.f32 %v1245_v13, %v1054_v14 }
 0x1fe   : > { %1063 = vadd.xlane.f32.xlu1 %v1062_v16 }
 0x28b   : > { %v1064_v18 = vpop.xlane.xlu1 %1063 }
 0x28c   : > { %v1072_v19 = vadd.f32 %v1246_v17, %v1064_v18 }
 0x28e   : > { %1073 = vst [vmem:[%s595_s16] sm:$0xff] %v1072_v19 }
 0x28f PF: > { %s1248_s21 = sshll.u32 %s1481_s30, 7  ;;  %s1088_s0 = sshll.u32 %s595_s16, 4  ;;  %s1089_s0 = int_to_ptr.vmem [resolvable:$true] %s1088_s0 }
 0x290   : > { %s1843_s29 = scalar_lea.hbm %s1907_s7, %s1248_s21  ;;  %s1075_s15 = scalar_lea.sflag [#allocation9], %s593_s18 }
 0x291   : > { %s1383_s14 = scalar_lea.vmem %s1089_s0, 128  ;;  %s1500_s22 = smov [#allocation8]  }
 0x292   : > { %p1384_p5 = scmp.ne.s32.totalorder %s1089_s0, %s1383_s14  ;;  %s1387_s12 = sshll.u32 %s1500_s22, 4  ;;  %s1388_s12 = int_to_ptr.vmem [resolvable:$false] %s1387_s12 }
 0x293   : > { %s1389_s27 = scalar_lea.vmem %s1388_s12, 256  ;;  %p1390_p9 = scmp.lt.s32.totalorder %s1089_s0, %s1388_s12 }
 0x294   : > { %p1385_p6 = pnand %p1384_p5, %p1613_p7  ;;  %p1391_p10 = scmp.lt.s32.totalorder %s1389_s27, %s1383_s14 }
 0x296   : > { %p1386_p8 = pneg %p1385_p6  ;;  %p1392_p11 = por %p1391_p10, %p1390_p9 }
 0x298   : > { %p1393_p13 = pnand %p1392_p11, %p1386_p8 }
 0x29a   : > { %1396 = shalt.err (!%p1393_p13)
}
 0x29b   : > { %s1397_s30 = scalar_lea.hbm %s1843_s29, 128  ;;  %s1401_s16 = scalar_lea.hbm %s1907_s7, 256 }
 0x29c   : > { %p1398_p0 = scmp.ne.s32.totalorder %s1843_s29, %s1397_s30  ;;  %p1402_p3 = scmp.lt.u32.totalorder %s1843_s29, %s1907_s7 }
 0x29d   : > { %p1403_p4 = scmp.lt.u32.totalorder %s1401_s16, %s1397_s30  ;;  %p1405_p6 = scmp.lt.u32.totalorder %s1397_s30, %s1843_s29 }
 0x29e   : > { %p1399_p1 = pnand %p1398_p0, %p1613_p7 }
 0x29f   : > { %p1404_p5 = por %p1403_p4, %p1402_p3 }
 0x2a0   : > { %p1400_p2 = pneg %p1399_p1 }
 0x2a1   : > { %p1406_p8 = por %p1405_p6, %p1404_p5 }
 0x2a3   : > { %p1407_p9 = pnand %p1406_p8, %p1400_p2 }
 0x2a5   : > { %1410 = shalt.err (!%p1407_p9)
}
 0x2a6   : > { %1283 = dma.vmem_to_hbm [thread:$0]  (%p1613_p7), %s1089_s0, 128, %s1843_s29, %s1075_s15  }
 0x2a7 PF: > { %p1289_p10 = scmp.ge.s32.totalorder %s1493_s10, 2  ;;  %s1100_s11 = sand.u32 1, %s1457_s24  }
 0x2a8   : > { %s1101_s14 = scalar_lea.sflag [#allocation9], %s1100_s11 }
 0x2a9   : > { %p1286_p11 = pnand %p1289_p10, %p1621_p12 }
 0x2ab   : > { %1452 = dma.done.wait (!%p1286_p11), %s1101_s14, 128  }
 0x2ac   : > { %1454 = vsyncadd (!%p1286_p11), %s1101_s14, 4294967168  ;;  %s20_s10 = sadd.s32 1, %s1493_s10   ;;  %s1921_s19 = sld [smem:[#allocation14_spill]] }
 0x2ad   : > { %p17_p13 = scmp.ge.s32.totalorder %s20_s10, 6   ;;  %s1922_s0 = sld [smem:[#allocation11_spill]] }
 0x2ae   : > { %s1923_s15 = sld [smem:[#allocation12_spill]]  ;;  %s1924_s24 = smov %s1461_s25 }
 0x2af   : > { %s1925_s25 = smov %s1465_s26  ;;  %s1926_s26 = smov %s1626_s23 }
 0x2b0   : > { %s1927_s27 = smov %s1473_s28  ;;  %s1929_s29 = smov %s1485_s8 }
 0x2b1   : > { %s1930_s30 = smov %s1489_s9  ;;  %19 = sbr.rel (!%p17_p13) target bundleno = 8 (0x8), region = 226 }
 0x2b2   : > { %s1928_s28 = smov %s1921_s19 }
 0x2b3   : > { %s1931_s8 = smov %s1922_s0 }
 0x2b4   : > { %s1932_s9 = smov %s1923_s15 }
 0x2b8   :  { %1106 = vsyncpa [#allocation9], 1 }
 0x2b9   :  { %1108 = vsyncpa [#allocation9 + $0x1], 1 }

</bundles_post_ra>
